<compile_context>
chip_gen: v5e
topology: v5e:2x2
jax: 0.10.0
libtpu: 0.0.40
codegen_flags: <defaults>
</compile_context>

<pallas_src>
import functools
import math

import jax
import jax.numpy as jnp
from jax import lax
from jax.experimental import pallas as pl
from jax.experimental.pallas import tpu as pltpu


def _round_up(x: int, m: int) -> int:
    return ((x + m - 1) // m) * m


# --------------- pass 1: L2 normalize rows + fold sqrt(1/t), emit bf16 ------

def _normalize_kernel(x_ref, o_ref, *, scale, eps):
    x = x_ref[...].astype(jnp.float32)
    ss = jnp.sum(x * x, axis=1, keepdims=True)
    # x / max(||x||, eps) == x * rsqrt(max(||x||^2, eps^2)); rsqrt -> EUP.
    inv = lax.rsqrt(jnp.maximum(ss, eps * eps))
    o_ref[...] = (x * (inv * scale)).astype(o_ref.dtype)


# --------------- pass 2: tiled sim/t + online per-row exp-sum ---------------

def _logdenom_kernel(q_ref, k_ref, out_ref, denom_ref, *, tk, pad_corr):
    j = pl.program_id(1)

    @pl.when(j == 0)
    def _init():
        denom_ref[...] = jnp.zeros_like(denom_ref)

    # reps were pre-scaled by sqrt(1/t) -> MXU emits sim/t directly.
    # Contract both operands on the last axis (no transpose before the MXU).
    sim_t = lax.dot_general(
        q_ref[...], k_ref[...],
        dimension_numbers=(((1,), (1,)), ((), ())),
        preferred_element_type=jnp.float32)          # (TQ, TK) f32
    e = jnp.exp(sim_t)                               # EUP-bound hot loop
    # Lane-wise accumulation with VPU adds into a (TQ, 128) accumulator; the
    # cross-lane (XLU) reduction is deferred to _finalize (once per row block).
    acc = denom_ref[...]
    for c in range(tk // 128):
        acc = acc + e[:, c * 128:(c + 1) * 128]
    denom_ref[...] = acc

    @pl.when(j == pl.num_programs(1) - 1)
    def _finalize():
        # Exact diagonal removal: the MXU's diagonal term is dot(q_row, q_row)
        # with f32 accumulation; recompute it on the VPU in f32 from the same
        # (already-resident) bf16 q block -> cancellation is exact up to
        # accumulation-order rounding, even with bf16 operands.
        q = q_ref[...].astype(jnp.float32)
        self_t = jnp.sum(q * q, axis=1, keepdims=True)             # (TQ, 1)
        row_sum = jnp.sum(denom_ref[...], axis=1, keepdims=True)   # (TQ, 1)
        # pad_corr: padded columns are exactly-zero rows -> exp(0)=1 each.
        denom = row_sum - jnp.exp(self_t) - pad_corr
        # Lane-dense store: one (1, 1, TQ) row -> unmasked full-width stores.
        out_ref[0, 0, :] = jnp.log(denom)[:, 0]


# --------------------------------- wrapper ----------------------------------

def info_nce_loss(emb_i: jax.Array, emb_j: jax.Array, temperature: float = 0.5,
                  *, matmul_dtype=jnp.bfloat16) -> jax.Array:
    """Pallas-TPU InfoNCE loss.  emb_i, emb_j: (B, D).  Returns scalar f32.

    matmul_dtype=jnp.bfloat16 (default) uses native-bf16 MXU with f32
    accumulation; pass matmul_dtype=jnp.float32 for bit-tighter parity with a
    full-f32 reference.
    """
    B, D = emb_i.shape
    assert emb_j.shape == (B, D)
    eps = 1e-12
    itemsize = jnp.dtype(matmul_dtype).itemsize

    # ---- positives (O(N*D), exact f32, matches torch F.normalize + diag) ----
    zi = emb_i.astype(jnp.float32)
    zj = emb_j.astype(jnp.float32)
    ni = jnp.maximum(jnp.sqrt(jnp.sum(zi * zi, axis=1)), eps)
    nj = jnp.maximum(jnp.sqrt(jnp.sum(zj * zj, axis=1)), eps)
    pos_t = jnp.sum(zi * zj, axis=1) / (ni * nj * float(temperature))   # (B,)

    # ---- tiling / padding (lane-dense, MXU-aligned, VMEM-budgeted) ----
    D_pad = _round_up(D, 128)
    TQ = min(512, max(128, int(pl.next_power_of_2(B))))   # row tile (pow2)
    TK0 = 512                                              # col tile target

    def _est(tq, tk):   # pass-2 VMEM estimate (double-buffered in/out + temps)
        return (2 * (tq + tk) * D_pad * itemsize      # q + k streams
                + 3 * tq * tk * 4                     # sim / exp f32 temps
                + tq * 128 * 4                        # denom accumulator
                + 2 * tq * 4)                         # output row

    while _est(TQ, TK0) > (36 << 20) and TK0 > 128:
        TK0 //= 2
    while _est(TQ, TK0) > (36 << 20) and TQ > 128:
        TQ //= 2

    B_pad = _round_up(B, TQ)          # each half padded to a row-tile multiple
    N_pad = 2 * B_pad                 # multiple of 2*TQ -> G_rows even (v7x)
    TK = min(TK0, N_pad)
    while N_pad % TK:                 # TK must divide N_pad (stays >= 128)
        TK //= 2

    G_rows = N_pad // TQ
    G_cols = N_pad // TK
    pad_corr = float(2 * (B_pad - B))   # exp(0)=1 per padded (all-zero) column

    def pad(e):
        return jnp.pad(e.astype(jnp.float32), ((0, B_pad - B), (0, D_pad - D)))

    # Concatenate / zero-pad in the wrapper (cheap XLA HBM copy).
    x = jnp.concatenate([pad(emb_i), pad(emb_j)], axis=0)   # (N_pad, D_pad)

    # ---- pass 1: row-wise L2 normalize, pre-scale by sqrt(1/t), cast ----
    scale = float(1.0 / math.sqrt(float(temperature)))
    R1 = min(1024, 2 * TQ)            # HBM-bound pass: big row tile
    while (R1 * D_pad * 2 * (4 + itemsize)) > (24 << 20) and R1 > 128:
        R1 //= 2
    vmem1 = int(min(max(2 * R1 * D_pad * 2 * (4 + itemsize), 32 << 20), 56 << 20))

    reps_s = pl.pallas_call(
        functools.partial(_normalize_kernel, scale=scale, eps=eps),
        out_shape=jax.ShapeDtypeStruct((N_pad, D_pad), matmul_dtype),
        grid_spec=pltpu.PrefetchScalarGridSpec(
            num_scalar_prefetch=0,
            grid=(N_pad // R1,),
            in_specs=[pl.BlockSpec((R1, D_pad), lambda i: (i, 0))],
            out_specs=pl.BlockSpec((R1, D_pad), lambda i: (i, 0))),
        compiler_params=pltpu.CompilerParams(
            dimension_semantics=("parallel",),
            vmem_limit_bytes=vmem1),
    )(x)

    # ---- pass 2: tiled (N_pad, N_pad) sim/t with online log-denominator ----
    vmem2 = int(min(max(2 * _est(TQ, TK), 32 << 20), 56 << 20))
    cost = pl.CostEstimate(
        flops=int(2 * N_pad * N_pad * D_pad),
        transcendentals=int(N_pad * N_pad + N_pad),
        bytes_accessed=int(itemsize * D_pad * N_pad * (1 + G_rows) + 4 * N_pad))

    logdenom = pl.pallas_call(
        functools.partial(_logdenom_kernel, tk=TK, pad_corr=pad_corr),
        out_shape=jax.ShapeDtypeStruct((G_rows, 1, TQ), jnp.float32),
        grid_spec=pltpu.PrefetchScalarGridSpec(
            num_scalar_prefetch=0,
            grid=(G_rows, G_cols),
            in_specs=[
                pl.BlockSpec((TQ, D_pad), lambda i, j: (i, 0)),   # q rows
                pl.BlockSpec((TK, D_pad), lambda i, j: (j, 0)),   # k cols
            ],
            out_specs=pl.BlockSpec((1, 1, TQ), lambda i, j: (i, 0, 0)),
            scratch_shapes=[pltpu.VMEM((TQ, 128), jnp.float32)]),  # denom acc
        compiler_params=pltpu.CompilerParams(
            dimension_semantics=("parallel", "arbitrary"),
            vmem_limit_bytes=vmem2),
        cost_estimate=cost,
    )(reps_s, reps_s)

    # ---- tiny O(N) wrapper finish: pick valid rows, subtract pos/t, mean ----
    logdenom = logdenom.reshape(N_pad)
    ld_i = logdenom[:B]                       # first half (valid rows)
    ld_j = logdenom[B_pad:B_pad + B]          # second half (valid rows)
    # loss_partial = -log(exp(pos/t)/denom) = log(denom) - pos/t
    return (jnp.sum(ld_i) + jnp.sum(ld_j) - 2.0 * jnp.sum(pos_t)) / (2 * B)


# --------------------------------- reference ---------------------------------

def _reference(emb_i, emb_j, temperature=0.5):
    # Pure-JAX mirror of the PyTorch module (HIGHEST-precision matmul so it
    # stands in for the full-f32 torch cosine_similarity).
    def normalize(x):
        n = jnp.sqrt(jnp.sum(x * x, axis=1, keepdims=True))
        return x / jnp.maximum(n, 1e-12)

    B = emb_i.shape[0]
    zi = normalize(emb_i.astype(jnp.float32))
    zj = normalize(emb_j.astype(jnp.float32))
    reps = jnp.concatenate([zi, zj], axis=0)
    sim = jnp.matmul(reps, reps.T, precision=jax.lax.Precision.HIGHEST)
    sim_ij = jnp.diagonal(sim, offset=B)
    sim_ji = jnp.diagonal(sim, offset=-B)
    positives = jnp.concatenate([sim_ij, sim_ji], axis=0)
    nominator = jnp.exp(positives / temperature)
    neg_mask = 1.0 - jnp.eye(2 * B, dtype=jnp.float32)
    denominator = jnp.sum(neg_mask * jnp.exp(sim / temperature), axis=1)
    loss_partial = -jnp.log(nominator / denominator)
    return jnp.sum(loss_partial) / (2 * B)


if __name__ == "__main__":
    key = jax.random.PRNGKey(0)
    k1, k2, k3, k4 = jax.random.split(key, 4)

    # Case 1: small shapes consistent with the module (batch=8, hidden=32).
    B, D = 8, 32
    emb_i = jax.random.normal(k1, (B, D), dtype=jnp.float32)
    emb_j = jax.random.normal(k2, (B, D), dtype=jnp.float32)

    ref = _reference(emb_i, emb_j, temperature=0.5)

    # Default path: bf16 MXU operands, f32 accumulation (perf configuration).
    loss_bf16 = info_nce_loss(emb_i, emb_j, temperature=0.5)
    jax.block_until_ready(loss_bf16)
    assert jnp.allclose(loss_bf16, ref, rtol=2e-3, atol=2e-3), (loss_bf16, ref)

    # f32 path: tight parity with the full-f32 reference.
    loss_f32 = info_nce_loss(emb_i, emb_j, temperature=0.5,
                             matmul_dtype=jnp.float32)
    jax.block_until_ready(loss_f32)
    assert jnp.allclose(loss_f32, ref, rtol=1e-3, atol=1e-3), (loss_f32, ref)

    # Case 2: unaligned shapes exercise row/col padding + pad_corr path.
    B2, D2 = 6, 40
    emb_i2 = jax.random.normal(k3, (B2, D2), dtype=jnp.float32)
    emb_j2 = jax.random.normal(k4, (B2, D2), dtype=jnp.float32)
    loss2 = info_nce_loss(emb_i2, emb_j2, temperature=0.5)
    jax.block_until_ready(loss2)
    ref2 = _reference(emb_i2, emb_j2, temperature=0.5)
    assert jnp.allclose(loss2, ref2, rtol=2e-3, atol=2e-3), (loss2, ref2)

    print("KERNEL_OK")
</pallas_src>

<mosaic_0001>
module attributes {stable_mosaic.version = 11 : i64} {
  func.func @_normalize_kernel(%arg0: i32, %arg1: memref<256x128xf32, #tpu.memory_space<vmem>>, %arg2: memref<256x128xbf16, #tpu.memory_space<vmem>>) attributes {dimension_semantics = [#tpu.dimension_semantics<parallel>], iteration_bounds = array<i64: 1>, scalar_prefetch = 0 : i64, scratch_operands = 0 : i64, tpu.core_type = #tpu.core_type<tc>, window_params = [{transform_indices = @transform_0, window_bounds = array<i64: 256, 128>}, {transform_indices = @transform_1, window_bounds = array<i64: 256, 128>}]} {
    %c0 = arith.constant 0 : index
    %c0_0 = arith.constant 0 : index
    %0 = vector.load %arg1[%c0, %c0_0] : memref<256x128xf32, #tpu.memory_space<vmem>>, vector<256x128xf32>
    %1 = arith.mulf %0, %0 : vector<256x128xf32>
    %cst = arith.constant dense<0.000000e+00> : vector<256xf32>
    %2 = vector.multi_reduction <add>, %1, %cst [1] : vector<256x128xf32> to vector<256xf32>
    %3 = vector.shape_cast %2 : vector<256xf32> to vector<256x1xf32>
    %cst_1 = arith.constant 1.000000e-24 : f32
    %4 = vector.broadcast %cst_1 : f32 to vector<256x1xf32>
    %5 = arith.maximumf %3, %4 : vector<256x1xf32>
    %6 = math.rsqrt %5 : vector<256x1xf32>
    %cst_2 = arith.constant 1.41421354 : f32
    %7 = vector.broadcast %cst_2 : f32 to vector<256x1xf32>
    %8 = arith.mulf %6, %7 : vector<256x1xf32>
    %9 = vector.broadcast %8 : vector<256x1xf32> to vector<256x128xf32>
    %10 = arith.mulf %0, %9 : vector<256x128xf32>
    %11 = arith.truncf %10 : vector<256x128xf32> to vector<256x128xbf16>
    %c0_3 = arith.constant 0 : index
    %c0_4 = arith.constant 0 : index
    %12 = vector.load %arg2[%c0_3, %c0_4] : memref<256x128xbf16, #tpu.memory_space<vmem>>, vector<256x128xbf16>
    tpu.vector_store %arg2[%c0_3, %c0_4], %11 {strides = array<i32>} : memref<256x128xbf16, #tpu.memory_space<vmem>>, vector<256x128xbf16>,
    return
  }
  func.func @transform_0(%arg0: i32) -> (i32, i32) {
    %c0_i32 = arith.constant 0 : i32
    %c0_i32_0 = arith.constant 0 : i32
    return %arg0, %c0_i32 : i32, i32
  }
  func.func @transform_1(%arg0: i32) -> (i32, i32) {
    %c0_i32 = arith.constant 0 : i32
    %c0_i32_0 = arith.constant 0 : i32
    return %arg0, %c0_i32 : i32, i32
  }
}

</mosaic_0001>

<bundles_post_ra>
// kernel: tpu_custom_call.1
= control target key start
LH: loop header
LB: loop body
LE: loop exit
PB: predicated region body
PF: predicated region fallthrough
CT: control target
= control target key end

     0   :  { %6 = vsyncpa [#allocation3], 0  ;;  %s1401_s0 = inlined_call_operand.hbm [shape: f32[256,128], index: 0, kind: input, shape index: {}]   ;;  %s1402_s1 = inlined_call_operand.hbm [shape: bf16[256,128], index: 1, kind: output, shape index: {}]  }
   0x1   :  { %7 = vsyncpa [#allocation4], 0  ;;  %s12_s8 = sshll.u32 %s1401_s0, 4  ;;  %s873_s9 = smov [#allocation2]   ;;  %s13_s8 = int_to_ptr.hbm [resolvable:$true] %s12_s8 }
   0x2   :  { %s14_s10 = sshll.u32 %s873_s9, 4  ;;  %s874_s11 = smov 128   ;;  %s15_s10 = int_to_ptr.vmem [resolvable:$true] %s14_s10 }
   0x3   :  { %s875_s12 = smov 8  }
   0x4   :  { %20 = dma.hbm_to_vmem [thread:$0]  %s13_s8, 4096, %s15_s10, [#allocation3], %s874_s11, %s874_s11, %s875_s12  }
   0x5   :  { %869 = dma.done.wait [#allocation3], 4096  }
   0x6   :  { %870 = vsyncadd [#allocation3], 4294963200  ;;  %v892_v0 = vld [vmem:[#allocation2 + $0x20] sm:$0xff]  ;;  %v894_v1 = vld [vmem:[#allocation2 + $0x10] sm:$0xff]  ;;  %s876_s0 = smov [#allocation5]   ;;  %s639_s16 = sshll.u32 %s1402_s1, 4  ;;  %s640_s16 = int_to_ptr.hbm [resolvable:$true] %s639_s16 }
   0x7   :  { %v896_v2 = vld [vmem:[#allocation2] sm:$0xff]  ;;  %v61_v3 = vmul.f32 %v892_v0, %v892_v0  ;;  %v59_v4 = vmul.f32 %v894_v1, %v894_v1  ;;  %v904_v6 = vld [vmem:[#allocation2 + $0x28] sm:$0xff]  ;;  %v906_v7 = vld [vmem:[#allocation2 + $0x18] sm:$0xff]  ;;  %s637_s13 = sshll.u32 %s876_s0, 4  ;;  %s877_s17 = smov 64   ;;  %s638_s13 = int_to_ptr.vmem [resolvable:$true] %s637_s13 }
   0x8   :  { %v57_v5 = vmul.f32 %v896_v2, %v896_v2  ;;  %v908_v8 = vld [vmem:[#allocation2 + $0x8] sm:$0xff]  ;;  %v62_v9 = vmul.f32 %v904_v6, %v904_v6  ;;  %v60_v10 = vmul.f32 %v906_v7, %v906_v7  ;;  %v916_v12 = vld [vmem:[#allocation2 + $0x40] sm:$0xff]  ;;  %v918_v13 = vld [vmem:[#allocation2 + $0x38] sm:$0xff]  ;;  %s878_s18 = smov 4  }
   0x9   :  { %97 = vadd.xlane.f32.xlu2 %v61_v3  ;;  %93 = vadd.xlane.f32.xlu1 %v59_v4  ;;  %v58_v11 = vmul.f32 %v908_v8, %v908_v8  ;;  %v920_v14 = vld [vmem:[#allocation2 + $0x30] sm:$0xff]  ;;  %v65_v15 = vmul.f32 %v916_v12, %v916_v12  ;;  %v64_v16 = vmul.f32 %v918_v13, %v918_v13  ;;  %v928_v18 = vld [vmem:[#allocation2 + $0x58] sm:$0xff]  ;;  %v932_v20 = vld [vmem:[#allocation2 + $0x48] sm:$0xff] }
   0xa   :  { %89 = vadd.xlane.f32.xlu0 %v57_v5  ;;  %v63_v17 = vmul.f32 %v920_v14, %v920_v14  ;;  %v930_v19 = vld [vmem:[#allocation2 + $0x50] sm:$0xff]  ;;  %v68_v21 = vmul.f32 %v928_v18, %v928_v18  ;;  %v66_v23 = vmul.f32 %v932_v20, %v932_v20  ;;  %v942_v25 = vld [vmem:[#allocation2 + $0x68] sm:$0xff]  ;;  %v944_v26 = vld [vmem:[#allocation2 + $0x60] sm:$0xff] }
   0xb   :  { %v67_v22 = vmul.f32 %v930_v19, %v930_v19  ;;  %v940_v24 = vld [vmem:[#allocation2 + $0x70] sm:$0xff]  ;;  %v70_v28 = vmul.f32 %v942_v25, %v942_v25  ;;  %v69_v29 = vmul.f32 %v944_v26, %v944_v26  ;;  %v952_v30 = vld [vmem:[#allocation2 + $0x88] sm:$0xff]  ;;  %v954_v31 = vld [vmem:[#allocation2 + $0x80] sm:$0xff] }
   0xc   :  { %v71_v27 = vmul.f32 %v940_v24, %v940_v24  ;;  %v956_v32 = vld [vmem:[#allocation2 + $0x78] sm:$0xff]  ;;  %v74_v33 = vmul.f32 %v952_v30, %v952_v30  ;;  %v73_v34 = vmul.f32 %v954_v31, %v954_v31  ;;  %v964_v36 = vld [vmem:[#allocation2 + $0xa0] sm:$0xff]  ;;  %v968_v38 = vld [vmem:[#allocation2 + $0x90] sm:$0xff] }
   0xd   :  { %v72_v35 = vmul.f32 %v956_v32, %v956_v32  ;;  %v966_v37 = vld [vmem:[#allocation2 + $0x98] sm:$0xff]  ;;  %v77_v39 = vmul.f32 %v964_v36, %v964_v36  ;;  %v75_v41 = vmul.f32 %v968_v38, %v968_v38  ;;  %v978_v43 = vld [vmem:[#allocation2 + $0xb0] sm:$0xff]  ;;  %v980_v44 = vld [vmem:[#allocation2 + $0xa8] sm:$0xff] }
   0xe   :  { %v76_v40 = vmul.f32 %v966_v37, %v966_v37  ;;  %v976_v42 = vld [vmem:[#allocation2 + $0xb8] sm:$0xff]  ;;  %v79_v46 = vmul.f32 %v978_v43, %v978_v43  ;;  %v78_v47 = vmul.f32 %v980_v44, %v980_v44  ;;  %v51_v48 = vld [vmem:[#allocation2 + $0xd0] sm:$0xff]  ;;  %v988_v49 = vld [vmem:[#allocation2 + $0xc8] sm:$0xff] }
   0xf   :  { %v80_v45 = vmul.f32 %v976_v42, %v976_v42  ;;  %v990_v50 = vld [vmem:[#allocation2 + $0xc0] sm:$0xff]  ;;  %v83_v51 = vmul.f32 %v51_v48, %v51_v48  ;;  %v82_v52 = vmul.f32 %v988_v49, %v988_v49  ;;  %v996_v54 = vld [vmem:[#allocation2 + $0xe8] sm:$0xff]  ;;  %v52_v56 = vld [vmem:[#allocation2 + $0xd8] sm:$0xff] }
  0x10   :  { %v81_v53 = vmul.f32 %v990_v50, %v990_v50  ;;  %v998_v55 = vld [vmem:[#allocation2 + $0xe0] sm:$0xff]  ;;  %v86_v57 = vmul.f32 %v996_v54, %v996_v54  ;;  %v84_v59 = vmul.f32 %v52_v56, %v52_v56  ;;  %v56_v60 = vld [vmem:[#allocation2 + $0xf8] sm:$0xff]  ;;  %v55_v61 = vld [vmem:[#allocation2 + $0xf0] sm:$0xff] }
  0x11   :  { %99 = vadd.xlane.f32.xlu2 %v62_v9  ;;  %95 = vadd.xlane.f32.xlu1 %v60_v10  ;;  %v85_v58 = vmul.f32 %v998_v55, %v998_v55  ;;  %v88_v62 = vmul.f32 %v56_v60, %v56_v60  ;;  %v87_v63 = vmul.f32 %v55_v61, %v55_v61 }
  0x12   :  { %91 = vadd.xlane.f32.xlu0 %v58_v11 }
  0x19   :  { %105 = vadd.xlane.f32.xlu2 %v65_v15  ;;  %103 = vadd.xlane.f32.xlu1 %v64_v16 }
  0x1a   :  { %101 = vadd.xlane.f32.xlu0 %v63_v17 }
  0x21   :  { %111 = vadd.xlane.f32.xlu2 %v68_v21  ;;  %109 = vadd.xlane.f32.xlu1 %v67_v22 }
  0x22   :  { %107 = vadd.xlane.f32.xlu0 %v66_v23 }
  0x29   :  { %117 = vadd.xlane.f32.xlu2 %v71_v27  ;;  %115 = vadd.xlane.f32.xlu1 %v70_v28 }
  0x2a   :  { %113 = vadd.xlane.f32.xlu0 %v69_v29 }
  0x31   :  { %123 = vadd.xlane.f32.xlu2 %v74_v33  ;;  %121 = vadd.xlane.f32.xlu1 %v73_v34 }
  0x32   :  { %119 = vadd.xlane.f32.xlu0 %v72_v35 }
  0x39   :  { %129 = vadd.xlane.f32.xlu2 %v77_v39  ;;  %127 = vadd.xlane.f32.xlu1 %v76_v40 }
  0x3a   :  { %125 = vadd.xlane.f32.xlu0 %v75_v41 }
  0x41   :  { %135 = vadd.xlane.f32.xlu2 %v80_v45  ;;  %133 = vadd.xlane.f32.xlu1 %v79_v46 }
  0x42   :  { %131 = vadd.xlane.f32.xlu0 %v78_v47 }
  0x49   :  { %141 = vadd.xlane.f32.xlu2 %v83_v51  ;;  %139 = vadd.xlane.f32.xlu1 %v82_v52 }
  0x4a   :  { %137 = vadd.xlane.f32.xlu0 %v81_v53 }
  0x51   :  { %147 = vadd.xlane.f32.xlu2 %v86_v57  ;;  %145 = vadd.xlane.f32.xlu1 %v85_v58 }
  0x52   :  { %143 = vadd.xlane.f32.xlu0 %v84_v59 }
  0x59   :  { %151 = vadd.xlane.f32.xlu1 %v88_v62 }
  0x5a   :  { %149 = vadd.xlane.f32.xlu0 %v87_v63 }
  0x7c   :  { %v98_v3 = vpop.xlane.xlu2 %97  ;;  %v94_v4 = vpop.xlane.xlu1 %93 }
  0x7d   :  { %v157_v5 = vmax.f32 %v98_v3, 1e-24  ;;  %v155_v9 = vmax.f32 %v94_v4, 1e-24  ;;  %v90_v10 = vpop.xlane.xlu0 %89 }
  0x7e   :  { %v1004_v11 = vmax.f32 %v90_v10, 1e-24 }
  0x7f   :  { %753 = vrsqrt.f32 %v157_v5  ;;  %vm231_vm0 = vweird.f32 %v157_v5  ;;  %vm211_vm2 = vweird.f32 %v155_v9 }
  0x80   :  { %755 = vrsqrt.f32 %v155_v9  ;;  %vm191_vm5 = vweird.f32 %v1004_v11 }
  0x81   :  { %757 = vrsqrt.f32 %v1004_v11 }
  0x84   :  { %v100_v15 = vpop.xlane.xlu2 %99  ;;  %v96_v16 = vpop.xlane.xlu1 %95 }
  0x85   :  { %v754_v17 = vpop.eup %753  ;;  %v1007_v21 = vmax.f32 %v100_v15, 1e-24  ;;  %v1009_v22 = vmax.f32 %v96_v16, 1e-24  ;;  %v92_v23 = vpop.xlane.xlu0 %91 }
  0x86   :  { %v756_v27 = vpop.eup %755  ;;  %v226_v28 = vmul.f32 %v754_v17, %v157_v5  ;;  %v1011_v29 = vmax.f32 %v92_v23, 1e-24  ;;  %vm232_vm1 = vweird.f32 %v754_v17 }
  0x87   :  { %v1013_v33 = vpop.eup %757  ;;  %v206_v34 = vmul.f32 %v756_v27, %v155_v9  ;;  %759 = vrsqrt.f32 %v1007_v21  ;;  %vm212_vm3 = vweird.f32 %v756_v27  ;;  %vm1026_vm4 = vmor %vm231_vm0, %vm232_vm1  ;;  %vm241_vm8 = vweird.f32 %v1007_v21 }
  0x88   :  { %v227_v35 = vmul.f32 %v754_v17, %v226_v28  ;;  %v186_v39 = vmul.f32 %v1013_v33, %v1004_v11  ;;  %761 = vrsqrt.f32 %v1009_v22  ;;  %vm1039_vm6 = vmor %vm211_vm2, %vm212_vm3  ;;  %vm192_vm7 = vweird.f32 %v1013_v33 }
  0x89   :  { %v207_v40 = vmul.f32 %v756_v27, %v206_v34  ;;  %763 = vrsqrt.f32 %v1011_v29  ;;  %vm221_vm9 = vweird.f32 %v1009_v22  ;;  %vm201_vm11 = vweird.f32 %v1011_v29  ;;  %vm1057_vm13 = vmor %vm191_vm5, %vm192_vm7 }
  0x8a   :  { %v228_v41 = vmul.f32 0.5, %v227_v35  ;;  %v187_v45 = vmul.f32 %v1013_v33, %v186_v39 }
  0x8b   :  { %v208_v46 = vmul.f32 0.5, %v207_v40 }
  0x8c   :  { %v229_v47 = vsub.f32 1.5, %v228_v41  ;;  %v188_v48 = vmul.f32 0.5, %v187_v45  ;;  %v106_v51 = vpop.xlane.xlu2 %105  ;;  %v104_v52 = vpop.xlane.xlu1 %103 }
  0x8d   :  { %v760_v53 = vpop.eup %759  ;;  %v209_v56 = vsub.f32 1.5, %v208_v46  ;;  %v1021_v57 = vmax.f32 %v106_v51, 1e-24  ;;  %v102_v58 = vpop.xlane.xlu0 %101  ;;  %v1036_v28 = vmax.f32 %v104_v52, 1e-24 }
  0x8e   :  { %v762_v59 = vpop.eup %761  ;;  %v230_v60 = vmul.f32 %v754_v17, %v229_v47  ;;  %v189_v61 = vsub.f32 1.5, %v188_v48  ;;  %v236_v62 = vmul.f32 %v760_v53, %v1007_v21  ;;  %vm242_vm10 = vweird.f32 %v760_v53 }
  0x8f   :  { %v764_v63 = vpop.eup %763  ;;  %v210_v4 = vmul.f32 %v756_v27, %v209_v56  ;;  %v216_v10 = vmul.f32 %v762_v59, %v1009_v22  ;;  %765 = vrsqrt.f32 %v1021_v57  ;;  %vm222_vm12 = vweird.f32 %v762_v59  ;;  %vm243_vm15 = vmor %vm241_vm8, %vm242_vm10 }
  0x90   :  { %v234_v15 = vsel %vm1026_vm4, %v754_v17, %v230_v60  ;;  %v237_v16 = vmul.f32 %v760_v53, %v236_v62  ;;  %v196_v23 = vmul.f32 %v764_v63, %v1011_v29  ;;  %v190_v35 = vmul.f32 %v1013_v33, %v189_v61  ;;  %vm223_vm0 = vmor %vm221_vm9, %vm222_vm12 }
  0x91   :  { %v217_v34 = vmul.f32 %v762_v59, %v216_v10  ;;  %v214_v17 = vsel %vm1039_vm6, %v756_v27, %v210_v4  ;;  %v509_v41 = vmul.f32 1.4142135, %v234_v15  ;;  %767 = vrsqrt.f32 %v1036_v28 }
  0x92   :  { %v238_v39 = vmul.f32 0.5, %v237_v16  ;;  %v197_v40 = vmul.f32 %v764_v63, %v196_v23  ;;  %v507_v52 = vmul.f32 1.4142135, %v214_v17  ;;  %vm202_vm14 = vweird.f32 %v764_v63 }
  0x93   :  { %v218_v9 = vmul.f32 0.5, %v217_v34  ;;  %v1061_v60 = vmax.f32 %v102_v58, 1e-24  ;;  %v194_v62 = vsel %vm1057_vm13, %v1013_v33, %v190_v35  ;;  %v541_v11 = vmul.f32 %v509_v41, %v892_v0  ;;  %vm203_vm1 = vmor %vm201_vm11, %vm202_vm14 }
  0x94   :  { %v239_v45 = vsub.f32 1.5, %v238_v39  ;;  %v198_v46 = vmul.f32 0.5, %v197_v40  ;;  %v112_v47 = vpop.xlane.xlu2 %111  ;;  %v110_v48 = vpop.xlane.xlu1 %109  ;;  %v505_v0 = vmul.f32 1.4142135, %v194_v62  ;;  %vm271_vm2 = vweird.f32 %v1021_v57 }
  0x95   :  { %v1051_v51 = vpop.eup %765  ;;  %v219_v56 = vsub.f32 1.5, %v218_v9  ;;  %v108_v61 = vpop.xlane.xlu0 %107  ;;  %769 = vrsqrt.f32 %v1061_v60  ;;  %v1073_v58 = vmax.f32 %v112_v47, 1e-24  ;;  %v1079_v5 = vmax.f32 %v110_v48, 1e-24 }
  0x96   :  { %v240_v3 = vmul.f32 %v760_v53, %v239_v45  ;;  %v199_v4 = vsub.f32 1.5, %v198_v46  ;;  %v266_v10 = vmul.f32 %v1051_v51, %v1021_v57  ;;  %v539_v29 = vmul.f32 %v507_v52, %v894_v1 }
  0x97   :  { %v220_v15 = vmul.f32 %v762_v59, %v219_v56  ;;  %771 = vrsqrt.f32 %v1073_v58  ;;  %v1085_v21 = vpop.eup %767  ;;  %v1094_v45 = vmax.f32 %v108_v61, 1e-24  ;;  %v537_v48 = vmul.f32 %v505_v0, %v896_v2 }
  0x98   :  { %v244_v16 = vsel %vm243_vm15, %v760_v53, %v240_v3  ;;  %v200_v33 = vmul.f32 %v764_v63, %v199_v4  ;;  %v267_v23 = vmul.f32 %v1051_v51, %v266_v10  ;;  %773 = vrsqrt.f32 %v1079_v5 }
  0x99   :  { %v510_v34 = vmul.f32 1.4142135, %v244_v16  ;;  %v224_v17 = vsel %vm223_vm0, %v762_v59, %v220_v15  ;;  %v256_v59 = vmul.f32 %v1085_v21, %v1036_v28  ;;  %vm261_vm3 = vweird.f32 %v1036_v28 }
  0x9a   :  { %v508_v53 = vmul.f32 1.4142135, %v224_v17  ;;  %v204_v35 = vsel %vm203_vm1, %v764_v63, %v200_v33  ;;  %v268_v22 = vmul.f32 0.5, %v267_v23  ;;  %vm272_vm4 = vweird.f32 %v1051_v51 }
  0x9b   :  { %v542_v39 = vmul.f32 %v510_v34, %v904_v6  ;;  %v506_v40 = vmul.f32 1.4142135, %v204_v35  ;;  %v1096_v47 = vpop.eup %769  ;;  %v257_v56 = vmul.f32 %v1085_v21, %v256_v59  ;;  %775 = vrsqrt.f32 %v1094_v45  ;;  %vm1125_vm9 = vmor %vm271_vm2, %vm272_vm4 }
  0x9c   :  { %v540_v41 = vmul.f32 %v508_v53, %v906_v7  ;;  %v269_v9 = vsub.f32 1.5, %v268_v22  ;;  %v118_v46 = vpop.xlane.xlu2 %117  ;;  %v116_v63 = vpop.xlane.xlu1 %115  ;;  %v246_v1 = vmul.f32 %v1096_v47, %v1061_v60  ;;  %vm251_vm5 = vweird.f32 %v1061_v60 }
  0x9d   :  { %v665_v6 = vpack.c.bf16 %v542_v39, %v541_v11  ;;  %v538_v27 = vmul.f32 %v506_v40, %v908_v8  ;;  %v114_v62 = vpop.xlane.xlu0 %113  ;;  %v1104_v7 = vmax.f32 %v118_v46, 1e-24  ;;  %v1106_v52 = vpop.eup %771  ;;  %v258_v2 = vmul.f32 0.5, %v257_v56 }
  0x9e   :  { %v660_v3 = vpack.c.bf16 %v540_v41, %v539_v29  ;;  %v774_v8 = vpop.eup %773  ;;  %v270_v4 = vmul.f32 %v1051_v51, %v269_v9  ;;  %v247_v10 = vmul.f32 %v1096_v47, %v246_v1  ;;  %v296_v11 = vmul.f32 %v1106_v52, %v1073_v58 }
  0x9f   :  { %733 = vst [vmem:[#allocation5 + $0x10] sm:$0xff] %v665_v6   ;;  %v655_v61 = vpack.c.bf16 %v538_v27, %v537_v48  ;;  %v259_v15 = vsub.f32 1.5, %v258_v2  ;;  %vm262_vm6 = vweird.f32 %v1085_v21  ;;  %vm301_vm7 = vweird.f32 %v1073_v58 }
  0xa0   :  { %732 = vst [vmem:[#allocation5 + $0x8] sm:$0xff] %v660_v3   ;;  %v286_v16 = vmul.f32 %v774_v8, %v1079_v5  ;;  %v248_v33 = vmul.f32 0.5, %v247_v10  ;;  %v297_v23 = vmul.f32 %v1106_v52, %v296_v11  ;;  %vm291_vm8 = vweird.f32 %v1079_v5  ;;  %vm263_vm11 = vmor %vm261_vm3, %vm262_vm6 }
  0xa1   :  { %656 = vst [vmem:[#allocation5] sm:$0xff] %v655_v61   ;;  %777 = vrsqrt.f32 %v1104_v7  ;;  %v260_v34 = vmul.f32 %v1085_v21, %v259_v15  ;;  %vm252_vm10 = vweird.f32 %v1096_v47  ;;  %v1131_v53 = vmax.f32 %v116_v63, 1e-24  ;;  %v776_v29 = vpop.eup %775 }
  0xa2   :  { %v287_v17 = vmul.f32 %v774_v8, %v286_v16  ;;  %v274_v35 = vsel %vm1125_vm9, %v1051_v51, %v270_v4  ;;  %v249_v22 = vsub.f32 1.5, %v248_v33  ;;  %v298_v57 = vmul.f32 0.5, %v297_v23  ;;  %vm253_vm13 = vmor %vm251_vm5, %vm252_vm10 }
  0xa3   :  { %v1138_v39 = vmax.f32 %v114_v62, 1e-24  ;;  %v264_v41 = vsel %vm263_vm11, %v1085_v21, %v260_v34  ;;  %vm302_vm12 = vweird.f32 %v1106_v52  ;;  %779 = vrsqrt.f32 %v1131_v53 }
  0xa4   :  { %v124_v40 = vpop.xlane.xlu2 %123  ;;  %v122_v59 = vpop.xlane.xlu1 %121  ;;  %v288_v9 = vmul.f32 0.5, %v287_v17  ;;  %v512_v46 = vmul.f32 1.4142135, %v264_v41  ;;  %v250_v51 = vmul.f32 %v1096_v47, %v249_v22  ;;  %v299_v63 = vsub.f32 1.5, %v298_v57  ;;  %vm303_vm0 = vmor %vm301_vm7, %vm302_vm12 }
  0xa5   :  { %v276_v28 = vmul.f32 %v776_v29, %v1094_v45  ;;  %v120_v48 = vpop.xlane.xlu0 %119  ;;  %vm292_vm14 = vweird.f32 %v774_v8  ;;  %vm281_vm15 = vweird.f32 %v1094_v45  ;;  %781 = vrsqrt.f32 %v1138_v39 }
  0xa6   :  { %v289_v6 = vsub.f32 1.5, %v288_v9  ;;  %v513_v27 = vmul.f32 1.4142135, %v274_v35  ;;  %v254_v56 = vsel %vm253_vm13, %v1096_v47, %v250_v51  ;;  %v300_v62 = vmul.f32 %v1106_v52, %v299_v63  ;;  %vm293_vm1 = vmor %vm291_vm8, %vm292_vm14 }
  0xa7   :  { %v1151_v21 = vpop.eup %777  ;;  %v277_v3 = vmul.f32 %v776_v29, %v276_v28  ;;  %v544_v1 = vmul.f32 %v512_v46, %v918_v13  ;;  %v511_v61 = vmul.f32 1.4142135, %v254_v56  ;;  %v1165_v10 = vmax.f32 %v124_v40, 1e-24 }
  0xa8   :  { %v290_v60 = vmul.f32 %v774_v8, %v289_v6  ;;  %v326_v2 = vmul.f32 %v1151_v21, %v1104_v7  ;;  %v304_v4 = vsel %vm303_vm0, %v1106_v52, %v300_v62  ;;  %v1167_v11 = vmax.f32 %v122_v59, 1e-24 }
  0xa9   :  { %v278_v47 = vmul.f32 0.5, %v277_v3  ;;  %v1169_v13 = vpop.eup %779  ;;  %v543_v15 = vmul.f32 %v511_v61, %v920_v14  ;;  %v516_v58 = vmul.f32 1.4142135, %v304_v4  ;;  %vm282_vm2 = vweird.f32 %v776_v29 }
  0xaa   :  { %v294_v16 = vsel %vm293_vm1, %v774_v8, %v290_v60  ;;  %v327_v33 = vmul.f32 %v1151_v21, %v326_v2  ;;  %v316_v5 = vmul.f32 %v1169_v13, %v1131_v53  ;;  %783 = vrsqrt.f32 %v1165_v10  ;;  %vm283_vm3 = vmor %vm281_vm15, %vm282_vm2 }
  0xab   :  { %v515_v23 = vmul.f32 1.4142135, %v294_v16  ;;  %v279_v0 = vsub.f32 1.5, %v278_v47  ;;  %v782_v17 = vpop.eup %781  ;;  %v670_v35 = vpack.c.bf16 %v544_v1, %v543_v15  ;;  %v548_v22 = vmul.f32 %v516_v58, %v928_v18 }
  0xac   :  { %v130_v52 = vpop.xlane.xlu2 %129  ;;  %v128_v34 = vpop.xlane.xlu1 %127  ;;  %v328_v57 = vmul.f32 0.5, %v327_v33  ;;  %v317_v40 = vmul.f32 %v1169_v13, %v316_v5  ;;  %v306_v59 = vmul.f32 %v782_v17, %v1138_v39  ;;  %vm331_vm4 = vweird.f32 %v1104_v7 }
  0xad   :  { %v547_v14 = vmul.f32 %v515_v23, %v930_v19  ;;  %v280_v8 = vmul.f32 %v776_v29, %v279_v0  ;;  %734 = vst [vmem:[#allocation5 + $0x18] sm:$0xff] %v670_v35   ;;  %785 = vrsqrt.f32 %v1167_v11  ;;  %v126_v63 = vpop.xlane.xlu0 %125  ;;  %v545_v19 = vmul.f32 %v513_v27, %v916_v12 }
  0xae   :  { %v329_v41 = vsub.f32 1.5, %v328_v57  ;;  %v318_v46 = vmul.f32 0.5, %v317_v40  ;;  %v307_v51 = vmul.f32 %v782_v17, %v306_v59  ;;  %vm321_vm5 = vweird.f32 %v1131_v53 }
  0xaf   :  { %v680_v18 = vpack.c.bf16 %v548_v22, %v547_v14  ;;  %v284_v9 = vsel %vm283_vm3, %v776_v29, %v280_v8  ;;  %v1186_v6 = vmax.f32 %v120_v48, 1e-24  ;;  %vm322_vm6 = vweird.f32 %v1169_v13 }
  0xb0   :  { %v514_v28 = vmul.f32 1.4142135, %v284_v9  ;;  %v319_v45 = vsub.f32 1.5, %v318_v46  ;;  %v308_v56 = vmul.f32 0.5, %v307_v51  ;;  %v1189_v62 = vmax.f32 %v130_v52, 1e-24  ;;  %v784_v3 = vpop.eup %783  ;;  %vm323_vm9 = vmor %vm321_vm5, %vm322_vm6 }
  0xb1   :  { %736 = vst [vmem:[#allocation5 + $0x28] sm:$0xff] %v680_v18   ;;  %v330_v1 = vmul.f32 %v1151_v21, %v329_v41  ;;  %vm332_vm7 = vweird.f32 %v1151_v21  ;;  %787 = vrsqrt.f32 %v1186_v6  ;;  %vm312_vm8 = vweird.f32 %v782_v17 }
  0xb2   :  { %v546_v29 = vmul.f32 %v514_v28, %v932_v20  ;;  %v320_v12 = vmul.f32 %v1169_v13, %v319_v45  ;;  %v309_v48 = vsub.f32 1.5, %v308_v56  ;;  %v356_v27 = vmul.f32 %v784_v3, %v1165_v10  ;;  %vm1207_vm11 = vmor %vm331_vm4, %vm332_vm7 }
  0xb3   :  { %v1197_v60 = vpop.eup %785  ;;  %vm311_vm10 = vweird.f32 %v1138_v39  ;;  %789 = vrsqrt.f32 %v1189_v62  ;;  %vm361_vm12 = vweird.f32 %v1165_v10  ;;  %v334_v53 = vsel %vm1207_vm11, %v1151_v21, %v330_v1 }
  0xb4   :  { %v134_v61 = vpop.xlane.xlu1 %133  ;;  %v675_v2 = vpack.c.bf16 %v546_v29, %v545_v19  ;;  %v136_v20 = vpop.xlane.xlu2 %135  ;;  %v324_v47 = vsel %vm323_vm9, %v1169_v13, %v320_v12  ;;  %v310_v15 = vmul.f32 %v782_v17, %v309_v48  ;;  %v357_v58 = vmul.f32 %v784_v3, %v356_v27  ;;  %vm313_vm13 = vmor %vm311_vm10, %vm312_vm8 }
  0xb5   :  { %v518_v39 = vmul.f32 1.4142135, %v324_v47  ;;  %v346_v7 = vmul.f32 %v1197_v60, %v1167_v11  ;;  %v1219_v16 = vmax.f32 %v128_v34, 1e-24  ;;  %v1221_v13 = vmax.f32 %v126_v63, 1e-24 }
  0xb6   :  { %735 = vst [vmem:[#allocation5 + $0x20] sm:$0xff] %v675_v2   ;;  %v314_v33 = vsel %vm313_vm13, %v782_v17, %v310_v15  ;;  %v358_v23 = vmul.f32 0.5, %v357_v58  ;;  %v1223_v0 = vmax.f32 %v136_v20, 1e-24  ;;  %vm362_vm14 = vweird.f32 %v784_v3  ;;  %v132_v17 = vpop.xlane.xlu0 %131 }
  0xb7   :  { %v788_v5 = vpop.eup %787  ;;  %v550_v52 = vmul.f32 %v518_v39, %v942_v25  ;;  %v517_v35 = vmul.f32 1.4142135, %v314_v33  ;;  %v347_v21 = vmul.f32 %v1197_v60, %v346_v7  ;;  %791 = vrsqrt.f32 %v1219_v16  ;;  %vm363_vm1 = vmor %vm361_vm12, %vm362_vm14 }
  0xb8   :  { %v359_v22 = vsub.f32 1.5, %v358_v23  ;;  %vm351_vm15 = vweird.f32 %v1167_v11  ;;  %v336_v34 = vmul.f32 %v788_v5, %v1186_v6  ;;  %vm341_vm0 = vweird.f32 %v1186_v6 }
  0xb9   :  { %v1230_v57 = vpop.eup %789  ;;  %v549_v14 = vmul.f32 %v517_v35, %v944_v26  ;;  %v348_v8 = vmul.f32 0.5, %v347_v21  ;;  %793 = vrsqrt.f32 %v1221_v13  ;;  %v519_v25 = vmul.f32 1.4142135, %v334_v53 }
  0xba   :  { %v360_v40 = vmul.f32 %v784_v3, %v359_v22  ;;  %v337_v59 = vmul.f32 %v788_v5, %v336_v34  ;;  %v386_v41 = vmul.f32 %v1230_v57, %v1189_v62  ;;  %vm352_vm2 = vweird.f32 %v1197_v60 }
  0xbb   :  { %v685_v18 = vpack.c.bf16 %v550_v52, %v549_v14  ;;  %v349_v9 = vsub.f32 1.5, %v348_v8  ;;  %795 = vrsqrt.f32 %v1223_v0  ;;  %v1242_v63 = vmax.f32 %v134_v61, 1e-24  ;;  %vm353_vm4 = vmor %vm351_vm15, %vm352_vm2 }
  0xbc   :  { %v364_v26 = vsel %vm363_vm1, %v784_v3, %v360_v40  ;;  %v338_v46 = vmul.f32 0.5, %v337_v59  ;;  %v387_v51 = vmul.f32 %v1230_v57, %v386_v41  ;;  %v1244_v19 = vpop.xlane.xlu1 %139  ;;  %vm391_vm3 = vweird.f32 %v1189_v62  ;;  %v142_v4 = vpop.xlane.xlu2 %141 }
  0xbd   :  { %v1246_v28 = vpop.eup %791  ;;  %737 = vst [vmem:[#allocation5 + $0x30] sm:$0xff] %v685_v18   ;;  %v522_v45 = vmul.f32 1.4142135, %v364_v26  ;;  %v350_v10 = vmul.f32 %v1197_v60, %v349_v9  ;;  %v1250_v56 = vmax.f32 %v132_v17, 1e-24  ;;  %vm342_vm5 = vweird.f32 %v788_v5 }
  0xbe   :  { %v339_v3 = vsub.f32 1.5, %v338_v46  ;;  %v388_v29 = vmul.f32 0.5, %v387_v51  ;;  %v376_v1 = vmul.f32 %v1246_v28, %v1219_v16  ;;  %v551_v48 = vmul.f32 %v519_v25, %v940_v24  ;;  %vm343_vm7 = vmor %vm341_vm0, %vm342_vm5  ;;  %v138_v53 = vpop.xlane.xlu0 %137 }
  0xbf   :  { %v1256_v12 = vpop.eup %793  ;;  %v354_v27 = vsel %vm353_vm4, %v1197_v60, %v350_v10  ;;  %vm381_vm6 = vweird.f32 %v1219_v16  ;;  %797 = vrsqrt.f32 %v1242_v63  ;;  %v554_v61 = vmul.f32 %v522_v45, %v952_v30 }
  0xc0   :  { %v521_v11 = vmul.f32 1.4142135, %v354_v27  ;;  %v340_v2 = vmul.f32 %v788_v5, %v339_v3  ;;  %v377_v20 = vmul.f32 %v1246_v28, %v376_v1  ;;  %v389_v15 = vsub.f32 1.5, %v388_v29 }
  0xc1   :  { %v1264_v47 = vpop.eup %795  ;;  %v366_v24 = vmul.f32 %v1256_v12, %v1221_v13  ;;  %vm371_vm8 = vweird.f32 %v1221_v13  ;;  %799 = vrsqrt.f32 %v1250_v56  ;;  %vm392_vm9 = vweird.f32 %v1230_v57 }
  0xc2   :  { %v553_v30 = vmul.f32 %v521_v11, %v954_v31  ;;  %v344_v60 = vsel %vm343_vm7, %v788_v5, %v340_v2  ;;  %v378_v58 = vmul.f32 0.5, %v377_v20  ;;  %v416_v6 = vmul.f32 %v1264_v47, %v1223_v0  ;;  %vm1297_vm15 = vmor %vm391_vm3, %vm392_vm9 }
  0xc3   :  { %v520_v39 = vmul.f32 1.4142135, %v344_v60  ;;  %v367_v7 = vmul.f32 %v1256_v12, %v366_v24  ;;  %vm421_vm10 = vweird.f32 %v1223_v0  ;;  %vm382_vm11 = vweird.f32 %v1246_v28 }
  0xc4   :  { %v695_v33 = vpack.c.bf16 %v554_v61, %v553_v30  ;;  %v379_v23 = vsub.f32 1.5, %v378_v58  ;;  %v1279_v52 = vmax.f32 %v142_v4, 1e-24  ;;  %v390_v35 = vmul.f32 %v1230_v57, %v389_v15  ;;  %v146_v14 = vpop.xlane.xlu1 %145  ;;  %vm383_vm13 = vmor %vm381_vm6, %vm382_vm11  ;;  %v148_v10 = vpop.xlane.xlu2 %147 }
  0xc5   :  { %v798_v31 = vpop.eup %797  ;;  %v552_v5 = vmul.f32 %v520_v39, %v956_v32  ;;  %v368_v21 = vmul.f32 0.5, %v367_v7  ;;  %v417_v22 = vmul.f32 %v1264_v47, %v416_v6  ;;  %vm411_vm12 = vweird.f32 %v1242_v63 }
  0xc6   :  { %739 = vst [vmem:[#allocation5 + $0x40] sm:$0xff] %v695_v33   ;;  %v380_v34 = vmul.f32 %v1246_v28, %v379_v23  ;;  %v406_v17 = vmul.f32 %v798_v31, %v1242_v63  ;;  %801 = vrsqrt.f32 %v1279_v52  ;;  %vm372_vm14 = vweird.f32 %v1256_v12  ;;  %v144_v61 = vpop.xlane.xlu0 %143 }
  0xc7   :  { %v800_v8 = vpop.eup %799  ;;  %v690_v25 = vpack.c.bf16 %v552_v5, %v551_v48  ;;  %v369_v32 = vsub.f32 1.5, %v368_v21  ;;  %v418_v40 = vmul.f32 0.5, %v417_v22  ;;  %vm422_vm0 = vweird.f32 %v1264_v47  ;;  %vm373_vm1 = vmor %vm371_vm8, %vm372_vm14 }
  0xc8   :  { %v384_v41 = vsel %vm383_vm13, %v1246_v28, %v380_v34  ;;  %v407_v18 = vmul.f32 %v798_v31, %v406_v17  ;;  %v396_v16 = vmul.f32 %v800_v8, %v1250_v56  ;;  %v394_v9 = vsel %vm1297_vm15, %v1230_v57, %v390_v35  ;;  %vm423_vm3 = vmor %vm421_vm10, %vm422_vm0 }
  0xc9   :  { %738 = vst [vmem:[#allocation5 + $0x38] sm:$0xff] %v690_v25   ;;  %v524_v26 = vmul.f32 1.4142135, %v384_v41  ;;  %v370_v46 = vmul.f32 %v1256_v12, %v369_v32  ;;  %v419_v62 = vsub.f32 1.5, %v418_v40  ;;  %vm412_vm2 = vweird.f32 %v798_v31 }
  0xca   :  { %v408_v51 = vmul.f32 0.5, %v407_v18  ;;  %v397_v28 = vmul.f32 %v800_v8, %v396_v16  ;;  %v1311_v45 = vmax.f32 %v1244_v19, 1e-24  ;;  %v1316_v1 = vmax.f32 %v138_v53, 1e-24  ;;  %vm413_vm5 = vmor %vm411_vm12, %vm412_vm2 }
  0xcb   :  { %v556_v3 = vmul.f32 %v524_v26, %v966_v37  ;;  %v374_v29 = vsel %vm373_vm1, %v1256_v12, %v370_v46  ;;  %v420_v57 = vmul.f32 %v1264_v47, %v419_v62  ;;  %vm402_vm4 = vweird.f32 %v800_v8 }
  0xcc   :  { %v1318_v48 = vpop.eup %801  ;;  %v523_v27 = vmul.f32 1.4142135, %v374_v29  ;;  %v409_v13 = vsub.f32 1.5, %v408_v51  ;;  %v398_v19 = vmul.f32 0.5, %v397_v28  ;;  %803 = vrsqrt.f32 %v1311_v45  ;;  %v152_v58 = vpop.xlane.xlu1 %151 }
  0xcd   :  { %v424_v37 = vsel %vm423_vm3, %v1264_v47, %v420_v57  ;;  %v446_v12 = vmul.f32 %v1318_v48, %v1279_v52  ;;  %v1328_v11 = vmax.f32 %v148_v10, 1e-24  ;;  %vm401_vm6 = vweird.f32 %v1250_v56 }
  0xce   :  { %v555_v2 = vmul.f32 %v523_v27, %v968_v38  ;;  %v528_v20 = vmul.f32 1.4142135, %v424_v37  ;;  %v410_v4 = vmul.f32 %v798_v31, %v409_v13  ;;  %v399_v15 = vsub.f32 1.5, %v398_v19  ;;  %vm403_vm7 = vmor %vm401_vm6, %vm402_vm4 }
  0xcf   :  { %v447_v0 = vmul.f32 %v1318_v48, %v446_v12  ;;  %805 = vrsqrt.f32 %v1316_v1  ;;  %v525_v47 = vmul.f32 1.4142135, %v394_v9  ;;  %v1340_v63 = vmax.f32 %v146_v14, 1e-24  ;;  %v150_v14 = vpop.xlane.xlu0 %149 }
  0xd0   :  { %v700_v24 = vpack.c.bf16 %v556_v3, %v555_v2  ;;  %v414_v30 = vsel %vm413_vm5, %v798_v31, %v410_v4  ;;  %v400_v60 = vmul.f32 %v800_v8, %v399_v15  ;;  %v560_v38 = vmul.f32 %v528_v20, %v976_v42 }
  0xd1   :  { %v527_v53 = vmul.f32 1.4142135, %v414_v30  ;;  %807 = vrsqrt.f32 %v1328_v11  ;;  %v448_v7 = vmul.f32 0.5, %v447_v0  ;;  %v1342_v6 = vmax.f32 %v144_v61, 1e-24 }
  0xd2   :  { %v804_v39 = vpop.eup %803  ;;  %740 = vst [vmem:[#allocation5 + $0x48] sm:$0xff] %v700_v24   ;;  %v404_v56 = vsel %vm403_vm7, %v800_v8, %v400_v60  ;;  %v1346_v5 = vmax.f32 %v152_v58, 1e-24  ;;  %809 = vrsqrt.f32 %v1340_v63  ;;  %v557_v35 = vmul.f32 %v525_v47, %v964_v36 }
  0xd3   :  { %v559_v33 = vmul.f32 %v527_v53, %v978_v43  ;;  %v526_v23 = vmul.f32 1.4142135, %v404_v56  ;;  %v436_v31 = vmul.f32 %v804_v39, %v1311_v45  ;;  %811 = vrsqrt.f32 %v1342_v6 }
  0xd4   :  { %v449_v25 = vsub.f32 1.5, %v448_v7  ;;  %813 = vrsqrt.f32 %v1346_v5  ;;  %vm451_vm8 = vweird.f32 %v1279_v52  ;;  %vm452_vm9 = vweird.f32 %v1318_v48 }
  0xd5   :  { %v806_v42 = vpop.eup %805  ;;  %v710_v21 = vpack.c.bf16 %v560_v38, %v559_v33  ;;  %v558_v22 = vmul.f32 %v526_v23, %v980_v44  ;;  %v437_v34 = vmul.f32 %v804_v39, %v436_v31  ;;  %vm441_vm10 = vweird.f32 %v1311_v45  ;;  %vm1371_vm2 = vmor %vm451_vm8, %vm452_vm9 }
  0xd6   :  { %v426_v17 = vmul.f32 %v806_v42, %v1316_v1  ;;  %vm442_vm11 = vweird.f32 %v804_v39  ;;  %v1358_v59 = vmax.f32 %v150_v14, 1e-24  ;;  %vm431_vm12 = vweird.f32 %v1316_v1 }
  0xd7   :  { %v808_v43 = vpop.eup %807  ;;  %742 = vst [vmem:[#allocation5 + $0x58] sm:$0xff] %v710_v21   ;;  %v705_v8 = vpack.c.bf16 %v558_v22, %v557_v35  ;;  %v438_v32 = vmul.f32 0.5, %v437_v34  ;;  %vm481_vm13 = vweird.f32 %v1328_v11  ;;  %v450_v9 = vmul.f32 %v1318_v48, %v449_v25  ;;  %vm443_vm14 = vmor %vm441_vm10, %vm442_vm11 }
  0xd8   :  { %v427_v36 = vmul.f32 %v806_v42, %v426_v17  ;;  %v476_v44 = vmul.f32 %v808_v43, %v1328_v11  ;;  %v810_v41 = vpop.eup %809  ;;  %815 = vrsqrt.f32 %v1358_v59  ;;  %vm432_vm15 = vweird.f32 %v806_v42  ;;  %v817_v17 = vld [vmem:[#allocation2 + $0xd0] sm:$0xff] }
  0xd9   :  { %741 = vst [vmem:[#allocation5 + $0x50] sm:$0xff] %v705_v8   ;;  %v439_v40 = vsub.f32 1.5, %v438_v32  ;;  %v466_v46 = vmul.f32 %v810_v41, %v1340_v63  ;;  %v812_v62 = vpop.eup %811  ;;  %vm471_vm0 = vweird.f32 %v1340_v63  ;;  %vm482_vm1 = vweird.f32 %v808_v43  ;;  %vm433_vm3 = vmor %vm431_vm12, %vm432_vm15  ;;  %v818_v8 = vld [vmem:[#allocation2 + $0xd8] sm:$0xff] }
  0xda   :  { %v428_v18 = vmul.f32 0.5, %v427_v36  ;;  %v477_v16 = vmul.f32 %v808_v43, %v476_v44  ;;  %v814_v45 = vpop.eup %813  ;;  %v456_v29 = vmul.f32 %v812_v62, %v1342_v6  ;;  %v454_v37 = vsel %vm1371_vm2, %v1318_v48, %v450_v9  ;;  %vm483_vm6 = vmor %vm481_vm13, %vm482_vm1  ;;  %v819_v44 = vld [vmem:[#allocation2 + $0xf8] sm:$0xff] }
  0xdb   :  { %v440_v26 = vmul.f32 %v804_v39, %v439_v40  ;;  %v467_v3 = vmul.f32 %v810_v41, %v466_v46  ;;  %v496_v61 = vmul.f32 %v814_v45, %v1346_v5  ;;  %vm461_vm4 = vweird.f32 %v1342_v6 }
  0xdc   :  { %v429_v51 = vsub.f32 1.5, %v428_v18  ;;  %v478_v28 = vmul.f32 0.5, %v477_v16  ;;  %v457_v2 = vmul.f32 %v812_v62, %v456_v29  ;;  %vm472_vm5 = vweird.f32 %v810_v41 }
  0xdd   :  { %v444_v10 = vsel %vm443_vm14, %v804_v39, %v440_v26  ;;  %v468_v12 = vmul.f32 0.5, %v467_v3  ;;  %v497_v4 = vmul.f32 %v814_v45, %v496_v61  ;;  %vm462_vm7 = vweird.f32 %v812_v62  ;;  %vm473_vm8 = vmor %vm471_vm0, %vm472_vm5 }
  0xde   :  { %v530_v27 = vmul.f32 1.4142135, %v444_v10  ;;  %v430_v13 = vmul.f32 %v806_v42, %v429_v51  ;;  %v479_v19 = vsub.f32 1.5, %v478_v28  ;;  %v816_v15 = vpop.eup %815  ;;  %v458_v24 = vmul.f32 0.5, %v457_v2  ;;  %vm463_vm11 = vmor %vm461_vm4, %vm462_vm7 }
  0xdf   :  { %v469_v48 = vsub.f32 1.5, %v468_v12  ;;  %v498_v30 = vmul.f32 0.5, %v497_v4  ;;  %v486_v60 = vmul.f32 %v816_v15, %v1358_v59  ;;  %vm501_vm9 = vweird.f32 %v1346_v5 }
  0xe0   :  { %v434_v52 = vsel %vm433_vm3, %v806_v42, %v430_v13  ;;  %v480_v20 = vmul.f32 %v808_v43, %v479_v19  ;;  %v562_v0 = vmul.f32 %v530_v27, %v988_v49  ;;  %v459_v39 = vsub.f32 1.5, %v458_v24 }
  0xe1   :  { %v529_v47 = vmul.f32 1.4142135, %v434_v52  ;;  %v470_v53 = vmul.f32 %v810_v41, %v469_v48  ;;  %v499_v49 = vsub.f32 1.5, %v498_v30  ;;  %vm502_vm10 = vweird.f32 %v814_v45 }
  0xe2   :  { %v484_v1 = vsel %vm483_vm6, %v808_v43, %v480_v20  ;;  %v487_v11 = vmul.f32 %v816_v15, %v486_v60  ;;  %v531_v56 = vmul.f32 1.4142135, %v454_v37  ;;  %v460_v23 = vmul.f32 %v812_v62, %v459_v39  ;;  %vm503_vm12 = vmor %vm501_vm9, %vm502_vm10 }
  0xe3   :  { %v561_v58 = vmul.f32 %v529_v47, %v990_v50  ;;  %v534_v38 = vmul.f32 1.4142135, %v484_v1  ;;  %v474_v33 = vsel %vm473_vm8, %v810_v41, %v470_v53  ;;  %v500_v50 = vmul.f32 %v814_v45, %v499_v49 }
  0xe4   :  { %v533_v42 = vmul.f32 1.4142135, %v474_v33  ;;  %v488_v35 = vmul.f32 0.5, %v487_v11  ;;  %v464_v63 = vsel %vm463_vm11, %v812_v62, %v460_v23  ;;  %vm492_vm13 = vweird.f32 %v816_v15 }
  0xe5   :  { %v715_v7 = vpack.c.bf16 %v562_v0, %v561_v58  ;;  %v566_v31 = vmul.f32 %v534_v38, %v996_v54  ;;  %v532_v21 = vmul.f32 1.4142135, %v464_v63  ;;  %v504_v22 = vsel %vm503_vm12, %v814_v45, %v500_v50 }
  0xe6   :  { %v565_v5 = vmul.f32 %v533_v42, %v998_v55  ;;  %v489_v34 = vsub.f32 1.5, %v488_v35  ;;  %v563_v14 = vmul.f32 %v817_v17, %v531_v56  ;;  %v536_v43 = vmul.f32 1.4142135, %v504_v22  ;;  %v820_v55 = vld [vmem:[#allocation2 + $0xf0] sm:$0xff] }
  0xe7   :  { %743 = vst [vmem:[#allocation5 + $0x60] sm:$0xff] %v715_v7   ;;  %v564_v25 = vmul.f32 %v818_v8, %v532_v21  ;;  %vm491_vm14 = vweird.f32 %v1358_v59 }
  0xe8   :  { %v725_v54 = vpack.c.bf16 %v566_v31, %v565_v5  ;;  %v490_v32 = vmul.f32 %v816_v15, %v489_v34  ;;  %vm493_vm15 = vmor %vm491_vm14, %vm492_vm13  ;;  %v568_v40 = vmul.f32 %v819_v44, %v536_v43 }
  0xe9   :  { %v720_v6 = vpack.c.bf16 %v564_v25, %v563_v14 }
  0xea   :  { %745 = vst [vmem:[#allocation5 + $0x70] sm:$0xff] %v725_v54   ;;  %v494_v36 = vsel %vm493_vm15, %v816_v15, %v490_v32 }
  0xeb   :  { %v535_v41 = vmul.f32 1.4142135, %v494_v36  ;;  %744 = vst [vmem:[#allocation5 + $0x68] sm:$0xff] %v720_v6  }
  0xed   :  { %v567_v18 = vmul.f32 %v820_v55, %v535_v41 }
  0xef   :  { %v730_v16 = vpack.c.bf16 %v568_v40, %v567_v18 }
  0xf1   :  { %746 = vst [vmem:[#allocation5 + $0x78] sm:$0xff] %v730_v16  }
  0xf2   :  { %645 = dma.vmem_to_hbm [thread:$0]  %s638_s13, 2048, %s640_s16, [#allocation4], %s877_s17, %s877_s17, %s878_s18  }
  0xf3   :  { %871 = dma.done.wait [#allocation4], 2048  }
  0xf4   :  { %872 = vsyncadd [#allocation4], 4294965248 }
  0xf5   :  { %650 = vsyncpa [#allocation3], 1 }
  0xf6   :  { %651 = vsyncpa [#allocation4], 1 }

</bundles_post_ra>
